<compile_context>
chip_gen: v5e
topology: v5e:2x2
jax: 0.10.0
libtpu: 0.0.40
codegen_flags: <defaults>
</compile_context>

<pallas_src>
import functools

import jax
import jax.numpy as jnp
from jax.experimental import pallas as pl
from jax.experimental.pallas import tpu as pltpu


def _round_up(x, m):
    return (x + m - 1) // m * m


_BIG = 3.0e38  # "+inf" sentinel (finite, fits f32) for running minima


def _make_chamfer_kernel(D, TG, TP, Ng, Np, n_gi, n_pj):
    """Builds the kernel for a fixed (padded) problem geometry."""

    def kernel(gt_ref, pred_ref, out_ref,
               rowmin_ref, acc_gt_ref, acc_pred_ref, colmin_ref):
        gi = pl.program_id(1)          # gt  tile index (outer reduction axis)
        pj = pl.program_id(2)          # pred tile index (inner reduction axis)

        gt = gt_ref[...]               # (TG, D)  gt points, xyz on lanes
        pr = pred_ref[...]             # (D, TP)  pred points, point idx on lanes

        # dist[i, j] = sum_d (gt[i, d] - pr[d, j])^2   -- VPU only, unrolled D.
        diff = gt[:, 0:1] - pr[0:1, :]
        dist = diff * diff
        for d in range(1, D):
            diff = gt[:, d:d + 1] - pr[d:d + 1, :]
            dist = dist + diff * diff                    # (TG, TP)

        # Validity masks for zero-padded points.
        row_ids = gi * TG + jax.lax.broadcasted_iota(jnp.int32, (TG, 1), 0)
        col_ids = pj * TP + jax.lax.broadcasted_iota(jnp.int32, (1, TP), 1)
        row_valid = row_ids < Ng                         # (TG, 1)
        col_valid = col_ids < Np                         # (1, TP)

        # Per-pred-point min over this gt tile (padded gt rows excluded).
        tile_colmin = jnp.min(jnp.where(row_valid, dist, _BIG),
                              axis=0, keepdims=True)     # (1, TP)
        # Per-gt-point min over this pred tile (padded pred cols excluded).
        tile_rowmin = jnp.min(jnp.where(col_valid, dist, _BIG),
                              axis=1, keepdims=True)     # (TG, 1)

        # ---- online minima ----------------------------------------------------
        # Running min over pred tiles for the current gt tile (reset at pj == 0).
        prev_row = jnp.where(pj == 0, _BIG, rowmin_ref[...])
        rowmin_ref[...] = jnp.minimum(prev_row, tile_rowmin)

        # Running min over gt tiles for pred tile pj (reset at gi == 0).
        prev_col = jnp.where(gi == 0, _BIG, colmin_ref[pj])
        colmin_ref[pj] = jnp.minimum(prev_col, tile_colmin)

        # ---- fold finished minima into the running sums ------------------------
        # All pred tiles seen for gt tile gi -> add its masked per-gt mins.
        @pl.when(pj == n_pj - 1)
        def _fold_gt_mins():
            prev = jnp.where(gi == 0, 0.0, acc_gt_ref[...])
            acc_gt_ref[...] = prev + jnp.where(row_valid, rowmin_ref[...], 0.0)

        # All gt tiles seen for pred tile pj -> add its masked per-pred mins.
        @pl.when(gi == n_gi - 1)
        def _fold_pred_mins():
            prev = jnp.where(pj == 0, 0.0, acc_pred_ref[...])
            acc_pred_ref[...] = prev + jnp.where(col_valid, colmin_ref[pj], 0.0)

        # ---- finalize: both means, single lane-dense store ---------------------
        @pl.when(jnp.logical_and(gi == n_gi - 1, pj == n_pj - 1))
        def _finalize():
            loss_1 = jnp.sum(acc_pred_ref[...]) * jnp.float32(1.0 / Np)
            loss_2 = jnp.sum(acc_gt_ref[...]) * jnp.float32(1.0 / Ng)
            out_ref[...] = jnp.full(out_ref.shape, loss_1 + loss_2,
                                    dtype=out_ref.dtype)

    return kernel


@functools.partial(jax.jit, static_argnames=("reduce",))
def chamfer_loss(preds, gts, reduce=False):
    """preds: (B, Np, 3), gts: (B, Ng, 3) -> (B,) loss, or scalar if reduce."""
    B, Np, D = preds.shape
    Bg, Ng, Dg = gts.shape
    assert B == Bg and D == Dg

    # Tile sizes: gt tile on the sublane axis, pred tile on the lane axis.
    # (TG, TP) = (256, 1024) keeps the f32 distance block at 1 MiB so temporaries
    # fit every generation's default scoped-VMEM budget (v5e 16 MiB, v6e/v7x
    # 32 MiB); raise TG/TP (and vmem_limit_bytes) on v6e for more per-step work.
    TG = min(256, _round_up(Ng, 8))
    TP = min(1024, _round_up(Np, 128))
    Ng_pad = _round_up(Ng, TG)
    Np_pad = _round_up(Np, TP)
    n_gi = Ng_pad // TG
    n_pj = Np_pad // TP

    # gt stays points-major (tiny coordinate dim last -> (TG, 1) sublane columns
    # inside the kernel); pred is transposed so the point index is lane-dense.
    gts_p = jnp.pad(gts.astype(jnp.float32),
                    ((0, 0), (0, Ng_pad - Ng), (0, 0)))
    preds_t = jnp.transpose(preds.astype(jnp.float32), (0, 2, 1))
    preds_p = jnp.pad(preds_t, ((0, 0), (0, 0), (0, Np_pad - Np)))

    kernel = _make_chamfer_kernel(D, TG, TP, Ng, Np, n_gi, n_pj)

    out = pl.pallas_call(
        kernel,
        out_shape=jax.ShapeDtypeStruct((B, 1, 128), jnp.float32),
        grid_spec=pltpu.PrefetchScalarGridSpec(
            num_scalar_prefetch=0,
            grid=(B, n_gi, n_pj),
            in_specs=[
                # gts:   (B, Ng_pad, D) -> kernel block (TG, D)
                pl.BlockSpec((None, TG, D), lambda b, gi, pj: (b, gi, 0)),
                # preds: (B, D, Np_pad) -> kernel block (D, TP)
                pl.BlockSpec((None, D, TP), lambda b, gi, pj: (b, 0, pj)),
            ],
            out_specs=pl.BlockSpec((1, 1, 128), lambda b, gi, pj: (b, 0, 0)),
            scratch_shapes=[
                pltpu.VMEM((TG, 1), jnp.float32),         # running per-gt min
                pltpu.VMEM((TG, 1), jnp.float32),         # sum of per-gt mins
                pltpu.VMEM((1, TP), jnp.float32),         # sum of per-pred mins
                pltpu.VMEM((n_pj, 1, TP), jnp.float32),   # per-pred-tile col min
            ],
        ),
        compiler_params=pltpu.CompilerParams(
            dimension_semantics=("parallel", "arbitrary", "arbitrary")),
    )(gts_p, preds_p)

    loss = out[:, 0, 0]                                   # (B,)
    if reduce:
        return jnp.mean(loss)
    return loss


def _chamfer_loss_ref(preds, gts, reduce=False):
    # Pure-JAX reference mirroring torch batch_pairwise_dist semantics.
    rx = jnp.sum(gts * gts, axis=-1)[:, :, None]          # (B, Ng, 1)
    ry = jnp.sum(preds * preds, axis=-1)[:, None, :]      # (B, 1, Np)
    zz = jnp.einsum("bid,bjd->bij", gts, preds)           # (B, Ng, Np)
    P = rx + ry - 2.0 * zz
    loss_1 = jnp.mean(jnp.min(P, axis=1), axis=-1)
    loss_2 = jnp.mean(jnp.min(P, axis=2), axis=-1)
    out = loss_1 + loss_2
    return jnp.mean(out) if reduce else out


if __name__ == "__main__":
    key = jax.random.PRNGKey(0)
    k1, k2, k3, k4 = jax.random.split(key, 4)

    # Small shapes consistent with the module: (batch, num_points, xyz).
    B, Np, Ng, D = 2, 16, 24, 3
    preds = jax.random.normal(k1, (B, Np, D), dtype=jnp.float32)
    gts = jax.random.normal(k2, (B, Ng, D), dtype=jnp.float32)

    out = jax.block_until_ready(chamfer_loss(preds, gts))
    ref = _chamfer_loss_ref(preds, gts)
    assert out.shape == (B,)
    assert jnp.allclose(out, ref, atol=1e-4, rtol=1e-3), (out, ref)

    # Multi-tile path (exercises the online-min tiling and padding masks).
    B2, Np2, Ng2 = 2, 1200, 700
    preds2 = jax.random.normal(k3, (B2, Np2, D), dtype=jnp.float32)
    gts2 = jax.random.normal(k4, (B2, Ng2, D), dtype=jnp.float32)
    out2 = jax.block_until_ready(chamfer_loss(preds2, gts2))
    ref2 = _chamfer_loss_ref(preds2, gts2)
    assert jnp.allclose(out2, ref2, atol=1e-4, rtol=1e-3), (out2, ref2)

    # reduce=True path.
    outr = jax.block_until_ready(chamfer_loss(preds, gts, reduce=True))
    refr = _chamfer_loss_ref(preds, gts, reduce=True)
    assert jnp.allclose(outr, refr, atol=1e-4, rtol=1e-3), (outr, refr)

    print("KERNEL_OK")
</pallas_src>

<mosaic_0001>
module attributes {stable_mosaic.version = 11 : i64} {
  func.func @kernel(%arg0: i32, %arg1: i32, %arg2: i32, %arg3: memref<1x24x3xf32, #tpu.memory_space<vmem>>, %arg4: memref<1x3x128xf32, #tpu.memory_space<vmem>>, %arg5: memref<1x1x128xf32, #tpu.memory_space<vmem>>, %arg6: memref<24x1xf32, #tpu.memory_space<vmem>>, %arg7: memref<24x1xf32, #tpu.memory_space<vmem>>, %arg8: memref<1x128xf32, #tpu.memory_space<vmem>>, %arg9: memref<1x1x128xf32, #tpu.memory_space<vmem>>) attributes {dimension_semantics = [#tpu.dimension_semantics<parallel>, #tpu.dimension_semantics<arbitrary>, #tpu.dimension_semantics<arbitrary>], iteration_bounds = array<i64: 2, 1, 1>, scalar_prefetch = 0 : i64, scratch_operands = 4 : i64, tpu.core_type = #tpu.core_type<tc>, window_params = [{transform_indices = @transform_0, window_bounds = array<i64: 1, 24, 3>}, {transform_indices = @transform_1, window_bounds = array<i64: 1, 3, 128>}, {transform_indices = @transform_2, window_bounds = array<i64: 1, 1, 128>}]} {
    %c0 = arith.constant 0 : index
    %c0_0 = arith.constant 0 : index
    %c0_1 = arith.constant 0 : index
    %0 = vector.load %arg3[%c0, %c0_0, %c0_1] : memref<1x24x3xf32, #tpu.memory_space<vmem>>, vector<1x24x3xf32>
    %1 = vector.shape_cast %0 : vector<1x24x3xf32> to vector<24x3xf32>
    %c0_2 = arith.constant 0 : index
    %c0_3 = arith.constant 0 : index
    %c0_4 = arith.constant 0 : index
    %2 = vector.load %arg4[%c0_2, %c0_3, %c0_4] : memref<1x3x128xf32, #tpu.memory_space<vmem>>, vector<1x3x128xf32>
    %3 = vector.shape_cast %2 : vector<1x3x128xf32> to vector<3x128xf32>
    %4 = vector.extract_strided_slice %1 {offsets = [0, 0], sizes = [24, 1], strides = [1, 1]} : vector<24x3xf32> to vector<24x1xf32>
    %5 = vector.extract_strided_slice %3 {offsets = [0, 0], sizes = [1, 128], strides = [1, 1]} : vector<3x128xf32> to vector<1x128xf32>
    %6 = vector.broadcast %4 : vector<24x1xf32> to vector<24x128xf32>
    %7 = vector.broadcast %5 : vector<1x128xf32> to vector<24x128xf32>
    %8 = arith.subf %6, %7 : vector<24x128xf32>
    %9 = arith.mulf %8, %8 : vector<24x128xf32>
    %10 = vector.extract_strided_slice %1 {offsets = [0, 1], sizes = [24, 1], strides = [1, 1]} : vector<24x3xf32> to vector<24x1xf32>
    %11 = vector.extract_strided_slice %3 {offsets = [1, 0], sizes = [1, 128], strides = [1, 1]} : vector<3x128xf32> to vector<1x128xf32>
    %12 = vector.broadcast %10 : vector<24x1xf32> to vector<24x128xf32>
    %13 = vector.broadcast %11 : vector<1x128xf32> to vector<24x128xf32>
    %14 = arith.subf %12, %13 : vector<24x128xf32>
    %15 = arith.mulf %14, %14 : vector<24x128xf32>
    %16 = arith.addf %9, %15 : vector<24x128xf32>
    %17 = vector.extract_strided_slice %1 {offsets = [0, 2], sizes = [24, 1], strides = [1, 1]} : vector<24x3xf32> to vector<24x1xf32>
    %18 = vector.extract_strided_slice %3 {offsets = [2, 0], sizes = [1, 128], strides = [1, 1]} : vector<3x128xf32> to vector<1x128xf32>
    %19 = vector.broadcast %17 : vector<24x1xf32> to vector<24x128xf32>
    %20 = vector.broadcast %18 : vector<1x128xf32> to vector<24x128xf32>
    %21 = arith.subf %19, %20 : vector<24x128xf32>
    %22 = arith.mulf %21, %21 : vector<24x128xf32>
    %23 = arith.addf %16, %22 : vector<24x128xf32>
    %c24_i32 = arith.constant 24 : i32
    %24 = arith.muli %arg1, %c24_i32 : i32
    %25 = tpu.iota {dimensions = array<i32: 0>} : vector<24x1xi32>
    %26 = vector.broadcast %24 : i32 to vector<24x1xi32>
    %27 = arith.addi %26, %25 : vector<24x1xi32>
    %c128_i32 = arith.constant 128 : i32
    %28 = arith.muli %arg2, %c128_i32 : i32
    %29 = tpu.iota {dimensions = array<i32: 1>} : vector<1x128xi32>
    %30 = vector.broadcast %28 : i32 to vector<1x128xi32>
    %31 = arith.addi %30, %29 : vector<1x128xi32>
    %c24_i32_5 = arith.constant 24 : i32
    %32 = vector.broadcast %c24_i32_5 : i32 to vector<24x1xi32>
    %33 = arith.cmpi slt, %27, %32 : vector<24x1xi32>
    %c16_i32 = arith.constant 16 : i32
    %34 = vector.broadcast %c16_i32 : i32 to vector<1x128xi32>
    %35 = arith.cmpi slt, %31, %34 : vector<1x128xi32>
    %cst = arith.constant 3.000000e+38 : f32
    %36 = vector.shape_cast %33 : vector<24x1xi1> to vector<24x1xi1>
    %37 = vector.broadcast %36 : vector<24x1xi1> to vector<24x128xi1>
    %38 = vector.broadcast %cst : f32 to vector<24x128xf32>
    %39 = arith.select %37, %23, %38 : vector<24x128xi1>, vector<24x128xf32>
    %cst_6 = arith.constant dense<0x7F800000> : vector<128xf32>
    %40 = vector.multi_reduction <minimumf>, %39, %cst_6 [0] : vector<24x128xf32> to vector<128xf32>
    %41 = vector.shape_cast %40 : vector<128xf32> to vector<1x128xf32>
    %cst_7 = arith.constant 3.000000e+38 : f32
    %42 = vector.shape_cast %35 : vector<1x128xi1> to vector<1x128xi1>
    %43 = vector.broadcast %42 : vector<1x128xi1> to vector<24x128xi1>
    %44 = vector.broadcast %cst_7 : f32 to vector<24x128xf32>
    %45 = arith.select %43, %23, %44 : vector<24x128xi1>, vector<24x128xf32>
    %cst_8 = arith.constant dense<0x7F800000> : vector<24xf32>
    %46 = vector.multi_reduction <minimumf>, %45, %cst_8 [1] : vector<24x128xf32> to vector<24xf32>
    %47 = vector.shape_cast %46 : vector<24xf32> to vector<24x1xf32>
    %c0_i32 = arith.constant 0 : i32
    %48 = arith.cmpi eq, %arg2, %c0_i32 : i32
    %c0_9 = arith.constant 0 : index
    %c0_10 = arith.constant 0 : index
    %49 = vector.load %arg6[%c0_9, %c0_10] : memref<24x1xf32, #tpu.memory_space<vmem>>, vector<24x1xf32>
    %cst_11 = arith.constant 3.000000e+38 : f32
    %50 = vector.broadcast %cst_11 : f32 to vector<24x1xf32>
    %51 = arith.select %48, %50, %49 : vector<24x1xf32>
    %52 = arith.minimumf %51, %47 : vector<24x1xf32>
    %c0_12 = arith.constant 0 : index
    %c0_13 = arith.constant 0 : index
    %53 = vector.load %arg6[%c0_12, %c0_13] : memref<24x1xf32, #tpu.memory_space<vmem>>, vector<24x1xf32>
    tpu.vector_store %arg6[%c0_12, %c0_13], %52 {strides = array<i32>} : memref<24x1xf32, #tpu.memory_space<vmem>>, vector<24x1xf32>,
    %c0_i32_14 = arith.constant 0 : i32
    %54 = arith.cmpi eq, %arg1, %c0_i32_14 : i32
    %55 = arith.index_cast %arg2 : i32 to index
    %c0_15 = arith.constant 0 : index
    %c0_16 = arith.constant 0 : index
    %56 = vector.load %arg9[%55, %c0_15, %c0_16] : memref<1x1x128xf32, #tpu.memory_space<vmem>>, vector<1x1x128xf32>
    %57 = vector.shape_cast %56 : vector<1x1x128xf32> to vector<1x128xf32>
    %cst_17 = arith.constant 3.000000e+38 : f32
    %58 = vector.broadcast %cst_17 : f32 to vector<1x128xf32>
    %59 = arith.select %54, %58, %57 : vector<1x128xf32>
    %60 = arith.minimumf %59, %41 : vector<1x128xf32>
    %61 = arith.index_cast %arg2 : i32 to index
    %c0_18 = arith.constant 0 : index
    %c0_19 = arith.constant 0 : index
    %62 = vector.load %arg9[%61, %c0_18, %c0_19] : memref<1x1x128xf32, #tpu.memory_space<vmem>>, vector<1x1x128xf32>
    %63 = vector.shape_cast %62 : vector<1x1x128xf32> to vector<1x128xf32>
    %64 = vector.shape_cast %60 : vector<1x128xf32> to vector<1x1x128xf32>
    tpu.vector_store %arg9[%61, %c0_18, %c0_19], %64 {strides = array<i32>} : memref<1x1x128xf32, #tpu.memory_space<vmem>>, vector<1x1x128xf32>,
    %c0_i32_20 = arith.constant 0 : i32
    %65 = arith.cmpi eq, %arg2, %c0_i32_20 : i32
    %66 = arith.extui %65 : i1 to i32
    %c0_i32_21 = arith.constant 0 : i32
    %67 = arith.cmpi ne, %66, %c0_i32_21 : i32
    scf.if %67 {
      %c0_i32_27 = arith.constant 0 : i32
      %76 = arith.cmpi eq, %arg1, %c0_i32_27 : i32
      %c0_28 = arith.constant 0 : index
      %c0_29 = arith.constant 0 : index
      %77 = vector.load %arg7[%c0_28, %c0_29] : memref<24x1xf32, #tpu.memory_space<vmem>>, vector<24x1xf32>
      %cst_30 = arith.constant 0.000000e+00 : f32
      %78 = vector.broadcast %cst_30 : f32 to vector<24x1xf32>
      %79 = arith.select %76, %78, %77 : vector<24x1xf32>
      %c0_31 = arith.constant 0 : index
      %c0_32 = arith.constant 0 : index
      %80 = vector.load %arg6[%c0_31, %c0_32] : memref<24x1xf32, #tpu.memory_space<vmem>>, vector<24x1xf32>
      %cst_33 = arith.constant 0.000000e+00 : f32
      %81 = vector.broadcast %cst_33 : f32 to vector<24x1xf32>
      %82 = arith.select %33, %80, %81 : vector<24x1xi1>, vector<24x1xf32>
      %83 = arith.addf %79, %82 : vector<24x1xf32>
      %c0_34 = arith.constant 0 : index
      %c0_35 = arith.constant 0 : index
      %84 = vector.load %arg7[%c0_34, %c0_35] : memref<24x1xf32, #tpu.memory_space<vmem>>, vector<24x1xf32>
      tpu.vector_store %arg7[%c0_34, %c0_35], %83 {strides = array<i32>} : memref<24x1xf32, #tpu.memory_space<vmem>>, vector<24x1xf32>,
    } else {
    }
    %c0_i32_22 = arith.constant 0 : i32
    %68 = arith.cmpi eq, %arg1, %c0_i32_22 : i32
    %69 = arith.extui %68 : i1 to i32
    %c0_i32_23 = arith.constant 0 : i32
    %70 = arith.cmpi ne, %69, %c0_i32_23 : i32
    scf.if %70 {
      %c0_i32_27 = arith.constant 0 : i32
      %76 = arith.cmpi eq, %arg2, %c0_i32_27 : i32
      %c0_28 = arith.constant 0 : index
      %c0_29 = arith.constant 0 : index
      %77 = vector.load %arg8[%c0_28, %c0_29] : memref<1x128xf32, #tpu.memory_space<vmem>>, vector<1x128xf32>
      %cst_30 = arith.constant 0.000000e+00 : f32
      %78 = vector.broadcast %cst_30 : f32 to vector<1x128xf32>
      %79 = arith.select %76, %78, %77 : vector<1x128xf32>
      %80 = arith.index_cast %arg2 : i32 to index
      %c0_31 = arith.constant 0 : index
      %c0_32 = arith.constant 0 : index
      %81 = vector.load %arg9[%80, %c0_31, %c0_32] : memref<1x1x128xf32, #tpu.memory_space<vmem>>, vector<1x1x128xf32>
      %82 = vector.shape_cast %81 : vector<1x1x128xf32> to vector<1x128xf32>
      %cst_33 = arith.constant 0.000000e+00 : f32
      %83 = vector.broadcast %cst_33 : f32 to vector<1x128xf32>
      %84 = arith.select %35, %82, %83 : vector<1x128xi1>, vector<1x128xf32>
      %85 = arith.addf %79, %84 : vector<1x128xf32>
      %c0_34 = arith.constant 0 : index
      %c0_35 = arith.constant 0 : index
      %86 = vector.load %arg8[%c0_34, %c0_35] : memref<1x128xf32, #tpu.memory_space<vmem>>, vector<1x128xf32>
      tpu.vector_store %arg8[%c0_34, %c0_35], %85 {strides = array<i32>} : memref<1x128xf32, #tpu.memory_space<vmem>>, vector<1x128xf32>,
    } else {
    }
    %c0_i32_24 = arith.constant 0 : i32
    %71 = arith.cmpi eq, %arg1, %c0_i32_24 : i32
    %c0_i32_25 = arith.constant 0 : i32
    %72 = arith.cmpi eq, %arg2, %c0_i32_25 : i32
    %73 = arith.andi %71, %72 : i1
    %74 = arith.extui %73 : i1 to i32
    %c0_i32_26 = arith.constant 0 : i32
    %75 = arith.cmpi ne, %74, %c0_i32_26 : i32
    scf.if %75 {
      %c0_27 = arith.constant 0 : index
      %c0_28 = arith.constant 0 : index
      %76 = vector.load %arg8[%c0_27, %c0_28] : memref<1x128xf32, #tpu.memory_space<vmem>>, vector<1x128xf32>
      %77 = vector.shape_cast %76 : vector<1x128xf32> to vector<1x1x128xf32>
      %cst_29 = arith.constant dense<0.000000e+00> : vector<1xf32>
      %78 = vector.multi_reduction <add>, %77, %cst_29 [1, 2] : vector<1x1x128xf32> to vector<1xf32>
      %79 = vector.shape_cast %78 : vector<1xf32> to vector<1x1x1xf32>
      %80 = vector.extract %79[0, 0, 0] : f32 from vector<1x1x1xf32>
      %cst_30 = arith.constant 6.250000e-02 : f32
      %81 = arith.mulf %80, %cst_30 : f32
      %c0_31 = arith.constant 0 : index
      %c0_32 = arith.constant 0 : index
      %82 = vector.load %arg7[%c0_31, %c0_32] : memref<24x1xf32, #tpu.memory_space<vmem>>, vector<24x1xf32>
      %83 = vector.shape_cast %82 : vector<24x1xf32> to vector<1x24x1xf32>
      %cst_33 = arith.constant dense<0.000000e+00> : vector<1xf32>
      %84 = vector.multi_reduction <add>, %83, %cst_33 [1, 2] : vector<1x24x1xf32> to vector<1xf32>
      %85 = vector.shape_cast %84 : vector<1xf32> to vector<1x1x1xf32>
      %86 = vector.extract %85[0, 0, 0] : f32 from vector<1x1x1xf32>
      %cst_34 = arith.constant 0.0416666679 : f32
      %87 = arith.mulf %86, %cst_34 : f32
      %88 = arith.addf %81, %87 : f32
      %89 = vector.broadcast %88 : f32 to vector<1x1x128xf32>
      %c0_35 = arith.constant 0 : index
      %c0_36 = arith.constant 0 : index
      %c0_37 = arith.constant 0 : index
      %90 = vector.load %arg5[%c0_35, %c0_36, %c0_37] : memref<1x1x128xf32, #tpu.memory_space<vmem>>, vector<1x1x128xf32>
      tpu.vector_store %arg5[%c0_35, %c0_36, %c0_37], %89 {strides = array<i32>} : memref<1x1x128xf32, #tpu.memory_space<vmem>>, vector<1x1x128xf32>,
    } else {
    }
    return
  }
  func.func @transform_0(%arg0: i32, %arg1: i32, %arg2: i32) -> (i32, i32, i32) {
    %c0_i32 = arith.constant 0 : i32
    %c0_i32_0 = arith.constant 0 : i32
    return %arg0, %arg1, %c0_i32 : i32, i32, i32
  }
  func.func @transform_1(%arg0: i32, %arg1: i32, %arg2: i32) -> (i32, i32, i32) {
    %c0_i32 = arith.constant 0 : i32
    %c0_i32_0 = arith.constant 0 : i32
    return %arg0, %c0_i32, %arg2 : i32, i32, i32
  }
  func.func @transform_2(%arg0: i32, %arg1: i32, %arg2: i32) -> (i32, i32, i32) {
    %c0_i32 = arith.constant 0 : i32
    %c0_i32_0 = arith.constant 0 : i32
    %c0_i32_1 = arith.constant 0 : i32
    return %arg0, %c0_i32, %c0_i32_0 : i32, i32, i32
  }
}

</mosaic_0001>

<bundles_post_ra>
// kernel: chamfer_loss.1
= control target key start
LH: loop header
LB: loop body
LE: loop exit
PB: predicated region body
PF: predicated region fallthrough
CT: control target
= control target key end

     0   :  { %s583_s9 = smov 0   ;;  %s585_s10 = smov 0   ;;  %s637_s0 = inlined_call_operand.vmem [shape: f32[2,24,3], index: 0, kind: input, shape index: {}]   ;;  %s638_s1 = inlined_call_operand.vmem [shape: f32[2,3,128], index: 1, kind: input, shape index: {}]   ;;  %s639_s2 = inlined_call_operand.vmem [shape: f32[2,1,128], index: 2, kind: output, shape index: {}]  }
   0x1   :  { %s587_s11 = smov 0  }
   0x2 LB: > { %s31_s12 = sadd.s32 1, %s559_s10  ;;  %p497_p0 = scmp.ge.s32.totalorder %s563_s11, 1  ;;  %s563_s11 = sphi %s587_s11, %s12_s11   ;;  %s559_s10 = sphi %s585_s10, %s641_s10   ;;  %s555_s9 = sphi %s583_s9, %s640_s9  }
   0x3   : > { %p33_p1 = scmp.ge.s32.totalorder %s31_s12, 2  ;;  %p152_p2 = scmp.lt.s32.totalorder %s563_s11, 3 }
   0x5   : > { %s643_s12 = smov (%p33_p1, %s31_s12), 0  ;;  %p153_p3 = pnand %p497_p0, %p152_p2 }
   0x6   : > { %p184_p4 = scmp.lt.s32.totalorder (!%p153_p3), %s555_s9, 1 }
   0x7   : > { %156 = sbr.rel (%p153_p3) target bundleno = 480 (0x1e0), region = 28 }
   0xc   : > { %v565_v0 = vmov 1   ;;  %v566_v1 = vmov 0   ;;  %s645_s9 = smov (!%p184_p4, %s555_s9), 1  ;;  %v567_v5 = vmov 2   ;;  %v283_v13 = vlaneseq }
   0xd   : > { %535 = vset.pattern.permute.xlu1 %v565_v0  ;;  %534 = vset.pattern.permute.xlu0 %v566_v1  ;;  %s502_s13 = smul.u32 24, %s645_s9  ;;  %s499_s17 = sshll.u32 %s645_s9, 2  ;;  %vm380_vm1 = vcmask 1040384   ;;  %vm332_vm2 = vcmask 7168  }
   0xe   : > { %536 = vset.pattern.permute.xlu2 %v566_v1  ;;  %s199_s20 = scalar_lea.vmem %s638_s1, %s499_s17  ;;  %v284_v18 = vand.u32 127, %v283_v13  ;;  %s202_s27 = scalar_lea.vmem %s639_s2, %s645_s9 }
   0xf   : > { %s191_s16 = scalar_lea.vmem %s637_s0, %s502_s13  ;;  %v206_v7 = vld [vmem:[%s199_s20] sm:$0x7] }
  0x10   : > { %v203_v2 = vld [vmem:[%s191_s16] sm:$0xff]  ;;  %v205_v3 = vld [vmem:[%s191_s16 + $0x10] sm:$0xff]  ;;  %v204_v4 = vld [vmem:[%s191_s16 + $0x8] sm:$0xff]  ;;  %v222_v8 = vperm.slane %v206_v7, 0  ;;  %v241_v9 = vperm.slane %v206_v7, 1  ;;  %v263_v16 = vperm.slane %v206_v7, 2 }
  0x11   : > { %230 = vperm.xlu1 %535, %v203_v2   ;;  %209 = vperm.xlu0 %534, %v203_v2   ;;  %vm290_vm0 = vcmp.lt.s32.totalorder %v284_v18, 16 }
  0x12   : > { %219 = vperm.xlu2 %536, %v205_v3  }
  0x19   : > { %234 = vperm.xlu1 %535, %v204_v4   ;;  %214 = vperm.xlu0 %534, %v204_v4  }
  0x1a   : > { %537 = vset.pattern.permute.xlu2 %v565_v0 }
  0x1b   : > { %238 = vperm.xlu2 %537, %v205_v3  }
  0x21   : > { %539 = vset.pattern.permute.xlu1 %v567_v5  ;;  %538 = vset.pattern.permute.xlu0 %v567_v5 }
  0x22   : > { %256 = vperm.xlu1 %539, %v204_v4   ;;  %252 = vperm.xlu0 %538, %v203_v2  }
  0x23   : > { %540 = vset.pattern.permute.xlu2 %v567_v5 }
  0x24   : > { %260 = vperm.xlu2 %540, %v205_v3  }
  0x6c   : > { %v220_v6 = vpop.permute.xlu2 %219 }
  0x6d   : > { %v225_v11 = vsub.f32 %v220_v6, %v222_v8 }
  0x6f   : > { %v228_v14 = vmul.f32 %v225_v11, %v225_v11 }
  0x75   : > { %v239_v10 = vpop.permute.xlu2 %238 }
  0x76   : > { %v244_v12 = vsub.f32 %v239_v10, %v241_v9 }
  0x78   : > { %v247_v15 = vmul.f32 %v244_v12, %v244_v12 }
  0x7a   : > { %v250_v19 = vadd.f32 %v247_v15, %v228_v14 }
  0x7e   : > { %v261_v17 = vpop.permute.xlu2 %260 }
  0x7f   : > { %v266_v20 = vsub.f32 %v261_v17, %v263_v16 }
  0x81   : > { %v269_v21 = vmul.f32 %v266_v20, %v266_v20 }
  0x83   : > { %v231_v22 = vpop.permute.xlu1 %230  ;;  %v210_v23 = vpop.permute.xlu0 %209  ;;  %v272_v24 = vadd.f32 %v269_v21, %v250_v19 }
  0x84   : > { %v242_v28 = vsub.f32 %v231_v22, %v241_v9  ;;  %v223_v29 = vsub.f32 %v210_v23, %v222_v8 }
  0x85   : > { %v312_v25 = vsel %vm290_vm0, %v272_v24, 3e+38 }
  0x86   : > { %317 = vmin.xlane.f32.xlu0 %v312_v25  ;;  %v245_v32 = vmul.f32 %v242_v28, %v242_v28  ;;  %v226_v33 = vmul.f32 %v223_v29, %v223_v29 }
  0x88   : > { %v248_v40 = vadd.f32 %v245_v32, %v226_v33 }
  0x8b   : > { %v235_v26 = vpop.permute.xlu1 %234  ;;  %v215_v27 = vpop.permute.xlu0 %214 }
  0x8c   : > { %v243_v30 = vsub.f32 %v235_v26, %v241_v9  ;;  %v224_v31 = vsub.f32 %v215_v27, %v222_v8 }
  0x8e   : > { %v246_v34 = vmul.f32 %v243_v30, %v243_v30  ;;  %v227_v35 = vmul.f32 %v224_v31, %v224_v31 }
  0x90   : > { %v249_v41 = vadd.f32 %v246_v34, %v227_v35 }
  0x94   : > { %v257_v36 = vpop.permute.xlu1 %256  ;;  %v253_v37 = vpop.permute.xlu0 %252 }
  0x95   : > { %v265_v38 = vsub.f32 %v257_v36, %v263_v16  ;;  %v264_v39 = vsub.f32 %v253_v37, %v263_v16 }
  0x97   : > { %v268_v42 = vmul.f32 %v265_v38, %v265_v38  ;;  %v267_v43 = vmul.f32 %v264_v39, %v264_v39 }
  0x99   : > { %v271_v44 = vadd.f32 %v268_v42, %v249_v41  ;;  %v270_v45 = vadd.f32 %v267_v43, %v248_v40 }
  0x9b   : > { %v311_v46 = vsel %vm290_vm0, %v271_v44, 3e+38  ;;  %v310_v47 = vsel %vm290_vm0, %v270_v45, 3e+38  ;;  %v300_v48 = vmin.f32 %v270_v45, %v271_v44 }
  0x9c   : > { %315 = vmin.xlane.f32.xlu2 %v311_v46  ;;  %313 = vmin.xlane.f32.xlu1 %v310_v47 }
  0x9d   : > { %v301_v49 = vmin.f32 %v300_v48, %v272_v24 }
  0x9f   : > { %v302_v50 = vrot.slane %v301_v49, 4 }
  0xa1   : > { %v303_v51 = vmin.f32 %v301_v49, %v302_v50 }
  0xa3   : > { %v304_v52 = vrot.slane %v303_v51, 2 }
  0xa5   : > { %v305_v53 = vmin.f32 %v303_v51, %v304_v52 }
  0xa7   : > { %v306_v54 = vrot.slane %v305_v53, 1 }
  0xa9   : > { %v307_v55 = vmin.f32 %v305_v53, %v306_v54 }
  0xab   : > { %v343_v56 = vmin.f32 %v307_v55, 3e+38 }
  0xad   : > { %344 = vst [vmem:[#allocation5] sm:$0x1] %v343_v56 }
  0xb4   : > { %v371_v57 = vld [vmem:[#allocation5] sm:$0x1] }
  0xb5   : > { %v372_v58 = vsel %vm290_vm0, %v371_v57, 0.0 }
  0xb6   : > { %374 = vst [vmem:[#allocation4] sm:$0x1] %v372_v58 }
  0xbd   : > { %v379_v59 = vld [vmem:[#allocation4] sm:$0x1] }
  0xbe   : > { %v381_v60 = vsel %vm380_vm1, %v379_v59, 0.0 }
  0xbf   : > { %382 = vadd.xlane.f32.xlu2 %v381_v60 }
  0xf9   : > { %v318_v61 = vpop.xlane.xlu0 %317 }
  0xfa   : > { %v331_v62 = vmin.f32 %v318_v61, 3e+38 }
  0xfc   : > { %335 = vst.msk [vmem:[#allocation2 + $0x10] sm:$0xff] %vm332_vm2, %v331_v62 }
 0x103   : > { %v356_v63 = vld [vmem:[#allocation2 + $0x10] sm:$0xff] }
 0x104   : > { %365 = vst.msk [vmem:[#allocation3 + $0x10] sm:$0xff] %vm332_vm2, %v356_v63 }
 0x10b   : > { %v394_v8 = vld [vmem:[#allocation3 + $0x10] sm:$0xff] }
 0x10c   : > { %v398_v12 = vsel %vm332_vm2, %v394_v8, 0.0 }
 0x10f   : > { %v316_v0 = vpop.xlane.xlu2 %315  ;;  %v314_v1 = vpop.xlane.xlu1 %313 }
 0x110   : > { %v330_v2 = vmin.f32 %v316_v0, 3e+38  ;;  %v329_v3 = vmin.f32 %v314_v1, 3e+38 }
 0x112   : > { %334 = vst.msk [vmem:[#allocation2 + $0x8] sm:$0xff] %vm332_vm2, %v330_v2 }
 0x113   : > { %333 = vst.msk [vmem:[#allocation2] sm:$0xff] %vm332_vm2, %v329_v3 }
 0x119   : > { %v355_v4 = vld [vmem:[#allocation2 + $0x8] sm:$0xff] }
 0x11a   : > { %364 = vst.msk [vmem:[#allocation3 + $0x8] sm:$0xff] %vm332_vm2, %v355_v4  ;;  %v354_v5 = vld [vmem:[#allocation2] sm:$0xff] }
 0x11b   : > { %363 = vst.msk [vmem:[#allocation3] sm:$0xff] %vm332_vm2, %v354_v5 }
 0x121   : > { %v393_v6 = vld [vmem:[#allocation3 + $0x8] sm:$0xff] }
 0x122   : > { %v392_v7 = vld [vmem:[#allocation3] sm:$0xff]  ;;  %v396_v9 = vsel %vm332_vm2, %v393_v6, 0.0 }
 0x123   : > { %v395_v10 = vsel %vm332_vm2, %v392_v7, 0.0 }
 0x124   : > { %v397_v11 = vadd.f32 %v396_v9, %v395_v10 }
 0x126   : > { %v399_v13 = vadd.f32 %v398_v12, %v397_v11 }
 0x128   : > { %400 = vadd.xlane.f32.xlu1 %v399_v13 }
 0x132   : > { %v383_v14 = vpop.xlane.xlu2 %382 }
 0x133   : > { %v384_v15 = vrot.slane %v383_v14, 4 }
 0x135   : > { %v385_v16 = vadd.f32 %v384_v15, %v383_v14 }
 0x137   : > { %v386_v17 = vrot.slane %v385_v16, 2 }
 0x139   : > { %v387_v18 = vadd.f32 %v386_v17, %v385_v16 }
 0x13b   : > { %v388_v19 = vrot.slane %v387_v18, 1 }
 0x13d   : > { %v389_v20 = vadd.f32 %v388_v19, %v387_v18 }
 0x13f   : > { %503 = vpush %v389_v20 }
 0x170   : > { %s504_s21 = spop %503 }
 0x171   : > { %s391_s22 = smul.f32 0.0625, %s504_s21 }
 0x19b   : > { %v401_v21 = vpop.xlane.xlu1 %400 }
 0x19c   : > { %v402_v22 = vrot.slane %v401_v21, 4 }
 0x19e   : > { %v403_v23 = vadd.f32 %v402_v22, %v401_v21 }
 0x1a0   : > { %v404_v24 = vrot.slane %v403_v23, 2 }
 0x1a2   : > { %v405_v25 = vadd.f32 %v404_v24, %v403_v23 }
 0x1a4   : > { %v406_v26 = vrot.slane %v405_v25, 1 }
 0x1a6   : > { %v407_v27 = vadd.f32 %v406_v26, %v405_v25 }
 0x1a8   : > { %505 = vpush %v407_v27 }
 0x1d9   : > { %s506_s23 = spop %505 }
 0x1da   : > { %s409_s24 = smul.f32 0.041666668, %s506_s23 }
 0x1dc   : > { %s410_s28 = sadd.f32 %s409_s24, %s391_s22 }
 0x1de   : > { %v411_v28 = vstv %s410_s28 }
 0x1df   : > { %412 = vst [vmem:[%s202_s27] sm:$0x1] %v411_v28 }
 0x1e0 PF: > { %s12_s11 = sadd.s32 1, %s563_s11   ;;  %s640_s9 = smov %s559_s10 }
 0x1e1   : > { %p9_p5 = scmp.ge.s32.totalorder %s12_s11, 4   ;;  %s641_s10 = smov %s643_s12 }
 0x1e3   :  { %11 = sbr.rel (!%p9_p5) target bundleno = 2 (0x2), region = 74 }

</bundles_post_ra>
